<compile_context>
chip_gen: v6e
topology: v6e:2x2x1
jax: 0.10.0
libtpu: 0.0.40
codegen_flags: <defaults>
</compile_context>

<pallas_src>
import jax
import jax.numpy as jnp
from jax.experimental import pallas as pl
from jax.experimental.pallas import tpu as pltpu


def _lstm_net_kernel(x2_ref, wih_ref, whh_ref, b_ref, wh_ref, bh_ref, out_ref):
    """Whole forward pass in one kernel (small shapes, everything fits VMEM).

    x2_ref : (T*B, D)   x reshaped in the wrapper (layout plumbing only)
    wih_ref: (D, 4H)    pre-transposed W_ih
    whh_ref: (H, 4H)    pre-transposed W_hh
    b_ref  : (1, 4H)    b_ih + b_hh
    wh_ref : (H, O)     fused head weight  W1^T @ W2^T
    bh_ref : (1, O)     fused head bias    b1 @ W2^T + b2
    out_ref: (1, B, O)
    """
    TB, _D = x2_ref.shape
    H = whh_ref.shape[0]
    B = out_ref.shape[1]
    T = TB // B

    whh = whh_ref[...]

    # Hoisted input projection + bias: one MXU matmul covers all timesteps,
    # bias broadcast emitted exactly once.
    gx = jnp.dot(x2_ref[...], wih_ref[...],
                 preferred_element_type=jnp.float32) + b_ref[...]      # (T*B, 4H)

    h = jnp.zeros((B, H), jnp.float32)
    c = jnp.zeros((B, H), jnp.float32)

    # Fully-unrolled recurrence (T small & static) -> straight-line code,
    # cross-iteration scheduling visibility, one MXU push per step.
    for t in range(T):
        gates = gx[t * B:(t + 1) * B, :] + jnp.dot(
            h, whh, preferred_element_type=jnp.float32)                # (B, 4H)
        # Two EUP pushes over the full 128-lane vreg instead of four 32-lane
        # ones; PyTorch gate order (i, f, g, o) preserved via static slices.
        sg = jax.nn.sigmoid(gates)
        tg = jnp.tanh(gates)
        i_g = sg[:, 0 * H:1 * H]
        f_g = sg[:, 1 * H:2 * H]
        g_g = tg[:, 2 * H:3 * H]
        o_g = sg[:, 3 * H:4 * H]
        c = f_g * c + i_g * g_g
        h = o_g * jnp.tanh(c)

    # Fused MLP head: Linear(H->64) -> Dropout(identity, eval) -> Linear(64->O)
    # collapsed into a single (B,H)@(H,O) matmul, then LeakyReLU(0.01).
    y = jnp.dot(h, wh_ref[...], preferred_element_type=jnp.float32) + bh_ref[...]
    out_ref[0] = jnp.where(y > 0, y, jnp.float32(0.01) * y)


def lstm_net_forward(x, params):
    """x: (T, B, D) float32. Returns (1, B, O)."""
    T, B, D = x.shape
    O = params["w2"].shape[0]

    xf = x.astype(jnp.float32)
    x2 = xf.reshape(T * B, D)                            # layout plumbing only

    # Pre-transpose / combine glue params in plain JAX.
    wih_t = params["w_ih"].T                             # (D, 4H)
    whh_t = params["w_hh"].T                             # (H, 4H)
    b = (params["b_ih"] + params["b_hh"])[None, :]       # (1, 4H)
    # Eval-time head fusion (Dropout = identity, no nonlinearity in between).
    w2_t = params["w2"].T                                # (64, O)
    w_head = params["w1"].T @ w2_t                       # (H, O)
    b_head = params["b1"][None, :] @ w2_t + params["b2"][None, :]   # (1, O)

    vmem = pl.BlockSpec(memory_space=pltpu.MemorySpace.VMEM)
    out = pl.pallas_call(
        _lstm_net_kernel,
        out_shape=jax.ShapeDtypeStruct((1, B, O), jnp.float32),
        in_specs=[vmem] * 6,
        out_specs=vmem,
    )(x2, wih_t, whh_t, b, w_head, b_head)
    return out


def init_params(key, input_dim, hidden_dim, output_dim):
    """Deterministic init mimicking PyTorch's U(-1/sqrt(H), 1/sqrt(H))."""
    ks = jax.random.split(key, 8)
    kH = 1.0 / jnp.sqrt(hidden_dim)
    k1 = 1.0 / jnp.sqrt(hidden_dim)   # fan_in of Linear(H, 64)
    k2 = 1.0 / jnp.sqrt(64.0)         # fan_in of Linear(64, O)

    def u(k, shape, bound):
        return jax.random.uniform(k, shape, jnp.float32, -bound, bound)

    return {
        "w_ih": u(ks[0], (4 * hidden_dim, input_dim), kH),
        "w_hh": u(ks[1], (4 * hidden_dim, hidden_dim), kH),
        "b_ih": u(ks[2], (4 * hidden_dim,), kH),
        "b_hh": u(ks[3], (4 * hidden_dim,), kH),
        "w1":   u(ks[4], (64, hidden_dim), k1),
        "b1":   u(ks[5], (64,), k1),
        "w2":   u(ks[6], (output_dim, 64), k2),
        "b2":   u(ks[7], (output_dim,), k2),
    }


def _reference_forward(x, p):
    """Pure-JAX reference (unfused, PyTorch-exact formulation) for validation."""
    T, B, D = x.shape
    H = p["w_hh"].shape[1]
    h = jnp.zeros((B, H), jnp.float32)
    c = jnp.zeros((B, H), jnp.float32)
    for t in range(T):
        gates = x[t] @ p["w_ih"].T + h @ p["w_hh"].T + p["b_ih"] + p["b_hh"]
        i = jax.nn.sigmoid(gates[:, 0 * H:1 * H])
        f = jax.nn.sigmoid(gates[:, 1 * H:2 * H])
        g = jnp.tanh(gates[:, 2 * H:3 * H])
        o = jax.nn.sigmoid(gates[:, 3 * H:4 * H])
        c = f * c + i * g
        h = o * jnp.tanh(c)
    z = h @ p["w1"].T + p["b1"]
    y = z @ p["w2"].T + p["b2"]
    y = jnp.where(y > 0, y, 0.01 * y)
    return y[None]


if __name__ == "__main__":
    # Small shapes consistent with the module's forward:
    SEQ, BATCH, INPUT_DIM, HIDDEN_DIM, OUTPUT_DIM = 8, 2, 16, 32, 8

    key = jax.random.PRNGKey(0)
    kx, kp = jax.random.split(key)
    x = jax.random.normal(kx, (SEQ, BATCH, INPUT_DIM), jnp.float32)
    params = init_params(kp, INPUT_DIM, HIDDEN_DIM, OUTPUT_DIM)

    out = lstm_net_forward(x, params)
    out = jax.block_until_ready(out)

    ref = _reference_forward(x, params)
    assert out.shape == (1, BATCH, OUTPUT_DIM), out.shape
    assert jnp.allclose(out, ref, atol=1e-4, rtol=1e-4), (
        float(jnp.max(jnp.abs(out - ref))))

    print("KERNEL_OK")
</pallas_src>

<mosaic_0001>
module attributes {stable_mosaic.version = 11 : i64} {
  func.func @_lstm_net_kernel(%arg0: memref<16x16xf32, #tpu.memory_space<vmem>>, %arg1: memref<16x128xf32, #tpu.memory_space<vmem>>, %arg2: memref<32x128xf32, #tpu.memory_space<vmem>>, %arg3: memref<1x128xf32, #tpu.memory_space<vmem>>, %arg4: memref<32x8xf32, #tpu.memory_space<vmem>>, %arg5: memref<1x8xf32, #tpu.memory_space<vmem>>, %arg6: memref<1x2x8xf32, #tpu.memory_space<vmem>>) attributes {dimension_semantics = [], scalar_prefetch = 0 : i64, scratch_operands = 0 : i64, tpu.core_type = #tpu.core_type<tc>} {
    %c0 = arith.constant 0 : index
    %c0_0 = arith.constant 0 : index
    %0 = vector.load %arg2[%c0, %c0_0] : memref<32x128xf32, #tpu.memory_space<vmem>>, vector<32x128xf32>
    %c0_1 = arith.constant 0 : index
    %c0_2 = arith.constant 0 : index
    %1 = vector.load %arg0[%c0_1, %c0_2] : memref<16x16xf32, #tpu.memory_space<vmem>>, vector<16x16xf32>
    %c0_3 = arith.constant 0 : index
    %c0_4 = arith.constant 0 : index
    %2 = vector.load %arg1[%c0_3, %c0_4] : memref<16x128xf32, #tpu.memory_space<vmem>>, vector<16x128xf32>
    %cst = arith.constant dense<0.000000e+00> : vector<16x128xf32>
    %3 = tpu.matmul %1, %2, %cst {dimension_numbers = #tpu.dot_dimension_numbers<[1], [0], [0], [1], [0, 0, 1, 1], [], []>} : vector<16x16xf32>, vector<16x128xf32>, vector<16x128xf32> -> vector<16x128xf32>
    %c0_5 = arith.constant 0 : index
    %c0_6 = arith.constant 0 : index
    %4 = vector.load %arg3[%c0_5, %c0_6] : memref<1x128xf32, #tpu.memory_space<vmem>>, vector<1x128xf32>
    %5 = vector.broadcast %4 : vector<1x128xf32> to vector<16x128xf32>
    %6 = arith.addf %3, %5 : vector<16x128xf32>
    %cst_7 = arith.constant 0.000000e+00 : f32
    %7 = vector.broadcast %cst_7 : f32 to vector<2x32xf32>
    %cst_8 = arith.constant 0.000000e+00 : f32
    %8 = vector.broadcast %cst_8 : f32 to vector<2x32xf32>
    %9 = vector.extract_strided_slice %6 {offsets = [0, 0], sizes = [2, 128], strides = [1, 1]} : vector<16x128xf32> to vector<2x128xf32>
    %cst_9 = arith.constant dense<0.000000e+00> : vector<2x128xf32>
    %10 = tpu.matmul %7, %0, %cst_9 {dimension_numbers = #tpu.dot_dimension_numbers<[1], [0], [0], [1], [0, 0, 1, 1], [], []>} : vector<2x32xf32>, vector<32x128xf32>, vector<2x128xf32> -> vector<2x128xf32>
    %11 = arith.addf %9, %10 : vector<2x128xf32>
    %12 = arith.negf %11 : vector<2x128xf32>
    %13 = math.exp %12 : vector<2x128xf32>
    %cst_10 = arith.constant 1.000000e+00 : f32
    %14 = vector.broadcast %cst_10 : f32 to vector<2x128xf32>
    %15 = arith.addf %14, %13 : vector<2x128xf32>
    %16 = arith.divf %14, %15 : vector<2x128xf32>
    %17 = math.tanh %11 : vector<2x128xf32>
    %18 = vector.extract_strided_slice %16 {offsets = [0, 0], sizes = [2, 32], strides = [1, 1]} : vector<2x128xf32> to vector<2x32xf32>
    %19 = vector.extract_strided_slice %16 {offsets = [0, 32], sizes = [2, 32], strides = [1, 1]} : vector<2x128xf32> to vector<2x32xf32>
    %20 = vector.extract_strided_slice %17 {offsets = [0, 64], sizes = [2, 32], strides = [1, 1]} : vector<2x128xf32> to vector<2x32xf32>
    %21 = vector.extract_strided_slice %16 {offsets = [0, 96], sizes = [2, 32], strides = [1, 1]} : vector<2x128xf32> to vector<2x32xf32>
    %22 = arith.mulf %19, %8 : vector<2x32xf32>
    %23 = arith.mulf %18, %20 : vector<2x32xf32>
    %24 = arith.addf %22, %23 : vector<2x32xf32>
    %25 = math.tanh %24 : vector<2x32xf32>
    %26 = arith.mulf %21, %25 : vector<2x32xf32>
    %27 = vector.extract_strided_slice %6 {offsets = [2, 0], sizes = [2, 128], strides = [1, 1]} : vector<16x128xf32> to vector<2x128xf32>
    %cst_11 = arith.constant dense<0.000000e+00> : vector<2x128xf32>
    %28 = tpu.matmul %26, %0, %cst_11 {dimension_numbers = #tpu.dot_dimension_numbers<[1], [0], [0], [1], [0, 0, 1, 1], [], []>} : vector<2x32xf32>, vector<32x128xf32>, vector<2x128xf32> -> vector<2x128xf32>
    %29 = arith.addf %27, %28 : vector<2x128xf32>
    %30 = arith.negf %29 : vector<2x128xf32>
    %31 = math.exp %30 : vector<2x128xf32>
    %cst_12 = arith.constant 1.000000e+00 : f32
    %32 = vector.broadcast %cst_12 : f32 to vector<2x128xf32>
    %33 = arith.addf %32, %31 : vector<2x128xf32>
    %34 = arith.divf %32, %33 : vector<2x128xf32>
    %35 = math.tanh %29 : vector<2x128xf32>
    %36 = vector.extract_strided_slice %34 {offsets = [0, 0], sizes = [2, 32], strides = [1, 1]} : vector<2x128xf32> to vector<2x32xf32>
    %37 = vector.extract_strided_slice %34 {offsets = [0, 32], sizes = [2, 32], strides = [1, 1]} : vector<2x128xf32> to vector<2x32xf32>
    %38 = vector.extract_strided_slice %35 {offsets = [0, 64], sizes = [2, 32], strides = [1, 1]} : vector<2x128xf32> to vector<2x32xf32>
    %39 = vector.extract_strided_slice %34 {offsets = [0, 96], sizes = [2, 32], strides = [1, 1]} : vector<2x128xf32> to vector<2x32xf32>
    %40 = arith.mulf %37, %24 : vector<2x32xf32>
    %41 = arith.mulf %36, %38 : vector<2x32xf32>
    %42 = arith.addf %40, %41 : vector<2x32xf32>
    %43 = math.tanh %42 : vector<2x32xf32>
    %44 = arith.mulf %39, %43 : vector<2x32xf32>
    %45 = vector.extract_strided_slice %6 {offsets = [4, 0], sizes = [2, 128], strides = [1, 1]} : vector<16x128xf32> to vector<2x128xf32>
    %cst_13 = arith.constant dense<0.000000e+00> : vector<2x128xf32>
    %46 = tpu.matmul %44, %0, %cst_13 {dimension_numbers = #tpu.dot_dimension_numbers<[1], [0], [0], [1], [0, 0, 1, 1], [], []>} : vector<2x32xf32>, vector<32x128xf32>, vector<2x128xf32> -> vector<2x128xf32>
    %47 = arith.addf %45, %46 : vector<2x128xf32>
    %48 = arith.negf %47 : vector<2x128xf32>
    %49 = math.exp %48 : vector<2x128xf32>
    %cst_14 = arith.constant 1.000000e+00 : f32
    %50 = vector.broadcast %cst_14 : f32 to vector<2x128xf32>
    %51 = arith.addf %50, %49 : vector<2x128xf32>
    %52 = arith.divf %50, %51 : vector<2x128xf32>
    %53 = math.tanh %47 : vector<2x128xf32>
    %54 = vector.extract_strided_slice %52 {offsets = [0, 0], sizes = [2, 32], strides = [1, 1]} : vector<2x128xf32> to vector<2x32xf32>
    %55 = vector.extract_strided_slice %52 {offsets = [0, 32], sizes = [2, 32], strides = [1, 1]} : vector<2x128xf32> to vector<2x32xf32>
    %56 = vector.extract_strided_slice %53 {offsets = [0, 64], sizes = [2, 32], strides = [1, 1]} : vector<2x128xf32> to vector<2x32xf32>
    %57 = vector.extract_strided_slice %52 {offsets = [0, 96], sizes = [2, 32], strides = [1, 1]} : vector<2x128xf32> to vector<2x32xf32>
    %58 = arith.mulf %55, %42 : vector<2x32xf32>
    %59 = arith.mulf %54, %56 : vector<2x32xf32>
    %60 = arith.addf %58, %59 : vector<2x32xf32>
    %61 = math.tanh %60 : vector<2x32xf32>
    %62 = arith.mulf %57, %61 : vector<2x32xf32>
    %63 = vector.extract_strided_slice %6 {offsets = [6, 0], sizes = [2, 128], strides = [1, 1]} : vector<16x128xf32> to vector<2x128xf32>
    %cst_15 = arith.constant dense<0.000000e+00> : vector<2x128xf32>
    %64 = tpu.matmul %62, %0, %cst_15 {dimension_numbers = #tpu.dot_dimension_numbers<[1], [0], [0], [1], [0, 0, 1, 1], [], []>} : vector<2x32xf32>, vector<32x128xf32>, vector<2x128xf32> -> vector<2x128xf32>
    %65 = arith.addf %63, %64 : vector<2x128xf32>
    %66 = arith.negf %65 : vector<2x128xf32>
    %67 = math.exp %66 : vector<2x128xf32>
    %cst_16 = arith.constant 1.000000e+00 : f32
    %68 = vector.broadcast %cst_16 : f32 to vector<2x128xf32>
    %69 = arith.addf %68, %67 : vector<2x128xf32>
    %70 = arith.divf %68, %69 : vector<2x128xf32>
    %71 = math.tanh %65 : vector<2x128xf32>
    %72 = vector.extract_strided_slice %70 {offsets = [0, 0], sizes = [2, 32], strides = [1, 1]} : vector<2x128xf32> to vector<2x32xf32>
    %73 = vector.extract_strided_slice %70 {offsets = [0, 32], sizes = [2, 32], strides = [1, 1]} : vector<2x128xf32> to vector<2x32xf32>
    %74 = vector.extract_strided_slice %71 {offsets = [0, 64], sizes = [2, 32], strides = [1, 1]} : vector<2x128xf32> to vector<2x32xf32>
    %75 = vector.extract_strided_slice %70 {offsets = [0, 96], sizes = [2, 32], strides = [1, 1]} : vector<2x128xf32> to vector<2x32xf32>
    %76 = arith.mulf %73, %60 : vector<2x32xf32>
    %77 = arith.mulf %72, %74 : vector<2x32xf32>
    %78 = arith.addf %76, %77 : vector<2x32xf32>
    %79 = math.tanh %78 : vector<2x32xf32>
    %80 = arith.mulf %75, %79 : vector<2x32xf32>
    %81 = vector.extract_strided_slice %6 {offsets = [8, 0], sizes = [2, 128], strides = [1, 1]} : vector<16x128xf32> to vector<2x128xf32>
    %cst_17 = arith.constant dense<0.000000e+00> : vector<2x128xf32>
    %82 = tpu.matmul %80, %0, %cst_17 {dimension_numbers = #tpu.dot_dimension_numbers<[1], [0], [0], [1], [0, 0, 1, 1], [], []>} : vector<2x32xf32>, vector<32x128xf32>, vector<2x128xf32> -> vector<2x128xf32>
    %83 = arith.addf %81, %82 : vector<2x128xf32>
    %84 = arith.negf %83 : vector<2x128xf32>
    %85 = math.exp %84 : vector<2x128xf32>
    %cst_18 = arith.constant 1.000000e+00 : f32
    %86 = vector.broadcast %cst_18 : f32 to vector<2x128xf32>
    %87 = arith.addf %86, %85 : vector<2x128xf32>
    %88 = arith.divf %86, %87 : vector<2x128xf32>
    %89 = math.tanh %83 : vector<2x128xf32>
    %90 = vector.extract_strided_slice %88 {offsets = [0, 0], sizes = [2, 32], strides = [1, 1]} : vector<2x128xf32> to vector<2x32xf32>
    %91 = vector.extract_strided_slice %88 {offsets = [0, 32], sizes = [2, 32], strides = [1, 1]} : vector<2x128xf32> to vector<2x32xf32>
    %92 = vector.extract_strided_slice %89 {offsets = [0, 64], sizes = [2, 32], strides = [1, 1]} : vector<2x128xf32> to vector<2x32xf32>
    %93 = vector.extract_strided_slice %88 {offsets = [0, 96], sizes = [2, 32], strides = [1, 1]} : vector<2x128xf32> to vector<2x32xf32>
    %94 = arith.mulf %91, %78 : vector<2x32xf32>
    %95 = arith.mulf %90, %92 : vector<2x32xf32>
    %96 = arith.addf %94, %95 : vector<2x32xf32>
    %97 = math.tanh %96 : vector<2x32xf32>
    %98 = arith.mulf %93, %97 : vector<2x32xf32>
    %99 = vector.extract_strided_slice %6 {offsets = [10, 0], sizes = [2, 128], strides = [1, 1]} : vector<16x128xf32> to vector<2x128xf32>
    %cst_19 = arith.constant dense<0.000000e+00> : vector<2x128xf32>
    %100 = tpu.matmul %98, %0, %cst_19 {dimension_numbers = #tpu.dot_dimension_numbers<[1], [0], [0], [1], [0, 0, 1, 1], [], []>} : vector<2x32xf32>, vector<32x128xf32>, vector<2x128xf32> -> vector<2x128xf32>
    %101 = arith.addf %99, %100 : vector<2x128xf32>
    %102 = arith.negf %101 : vector<2x128xf32>
    %103 = math.exp %102 : vector<2x128xf32>
    %cst_20 = arith.constant 1.000000e+00 : f32
    %104 = vector.broadcast %cst_20 : f32 to vector<2x128xf32>
    %105 = arith.addf %104, %103 : vector<2x128xf32>
    %106 = arith.divf %104, %105 : vector<2x128xf32>
    %107 = math.tanh %101 : vector<2x128xf32>
    %108 = vector.extract_strided_slice %106 {offsets = [0, 0], sizes = [2, 32], strides = [1, 1]} : vector<2x128xf32> to vector<2x32xf32>
    %109 = vector.extract_strided_slice %106 {offsets = [0, 32], sizes = [2, 32], strides = [1, 1]} : vector<2x128xf32> to vector<2x32xf32>
    %110 = vector.extract_strided_slice %107 {offsets = [0, 64], sizes = [2, 32], strides = [1, 1]} : vector<2x128xf32> to vector<2x32xf32>
    %111 = vector.extract_strided_slice %106 {offsets = [0, 96], sizes = [2, 32], strides = [1, 1]} : vector<2x128xf32> to vector<2x32xf32>
    %112 = arith.mulf %109, %96 : vector<2x32xf32>
    %113 = arith.mulf %108, %110 : vector<2x32xf32>
    %114 = arith.addf %112, %113 : vector<2x32xf32>
    %115 = math.tanh %114 : vector<2x32xf32>
    %116 = arith.mulf %111, %115 : vector<2x32xf32>
    %117 = vector.extract_strided_slice %6 {offsets = [12, 0], sizes = [2, 128], strides = [1, 1]} : vector<16x128xf32> to vector<2x128xf32>
    %cst_21 = arith.constant dense<0.000000e+00> : vector<2x128xf32>
    %118 = tpu.matmul %116, %0, %cst_21 {dimension_numbers = #tpu.dot_dimension_numbers<[1], [0], [0], [1], [0, 0, 1, 1], [], []>} : vector<2x32xf32>, vector<32x128xf32>, vector<2x128xf32> -> vector<2x128xf32>
    %119 = arith.addf %117, %118 : vector<2x128xf32>
    %120 = arith.negf %119 : vector<2x128xf32>
    %121 = math.exp %120 : vector<2x128xf32>
    %cst_22 = arith.constant 1.000000e+00 : f32
    %122 = vector.broadcast %cst_22 : f32 to vector<2x128xf32>
    %123 = arith.addf %122, %121 : vector<2x128xf32>
    %124 = arith.divf %122, %123 : vector<2x128xf32>
    %125 = math.tanh %119 : vector<2x128xf32>
    %126 = vector.extract_strided_slice %124 {offsets = [0, 0], sizes = [2, 32], strides = [1, 1]} : vector<2x128xf32> to vector<2x32xf32>
    %127 = vector.extract_strided_slice %124 {offsets = [0, 32], sizes = [2, 32], strides = [1, 1]} : vector<2x128xf32> to vector<2x32xf32>
    %128 = vector.extract_strided_slice %125 {offsets = [0, 64], sizes = [2, 32], strides = [1, 1]} : vector<2x128xf32> to vector<2x32xf32>
    %129 = vector.extract_strided_slice %124 {offsets = [0, 96], sizes = [2, 32], strides = [1, 1]} : vector<2x128xf32> to vector<2x32xf32>
    %130 = arith.mulf %127, %114 : vector<2x32xf32>
    %131 = arith.mulf %126, %128 : vector<2x32xf32>
    %132 = arith.addf %130, %131 : vector<2x32xf32>
    %133 = math.tanh %132 : vector<2x32xf32>
    %134 = arith.mulf %129, %133 : vector<2x32xf32>
    %135 = vector.extract_strided_slice %6 {offsets = [14, 0], sizes = [2, 128], strides = [1, 1]} : vector<16x128xf32> to vector<2x128xf32>
    %cst_23 = arith.constant dense<0.000000e+00> : vector<2x128xf32>
    %136 = tpu.matmul %134, %0, %cst_23 {dimension_numbers = #tpu.dot_dimension_numbers<[1], [0], [0], [1], [0, 0, 1, 1], [], []>} : vector<2x32xf32>, vector<32x128xf32>, vector<2x128xf32> -> vector<2x128xf32>
    %137 = arith.addf %135, %136 : vector<2x128xf32>
    %138 = arith.negf %137 : vector<2x128xf32>
    %139 = math.exp %138 : vector<2x128xf32>
    %cst_24 = arith.constant 1.000000e+00 : f32
    %140 = vector.broadcast %cst_24 : f32 to vector<2x128xf32>
    %141 = arith.addf %140, %139 : vector<2x128xf32>
    %142 = arith.divf %140, %141 : vector<2x128xf32>
    %143 = math.tanh %137 : vector<2x128xf32>
    %144 = vector.extract_strided_slice %142 {offsets = [0, 0], sizes = [2, 32], strides = [1, 1]} : vector<2x128xf32> to vector<2x32xf32>
    %145 = vector.extract_strided_slice %142 {offsets = [0, 32], sizes = [2, 32], strides = [1, 1]} : vector<2x128xf32> to vector<2x32xf32>
    %146 = vector.extract_strided_slice %143 {offsets = [0, 64], sizes = [2, 32], strides = [1, 1]} : vector<2x128xf32> to vector<2x32xf32>
    %147 = vector.extract_strided_slice %142 {offsets = [0, 96], sizes = [2, 32], strides = [1, 1]} : vector<2x128xf32> to vector<2x32xf32>
    %148 = arith.mulf %145, %132 : vector<2x32xf32>
    %149 = arith.mulf %144, %146 : vector<2x32xf32>
    %150 = arith.addf %148, %149 : vector<2x32xf32>
    %151 = math.tanh %150 : vector<2x32xf32>
    %152 = arith.mulf %147, %151 : vector<2x32xf32>
    %c0_25 = arith.constant 0 : index
    %c0_26 = arith.constant 0 : index
    %153 = vector.load %arg4[%c0_25, %c0_26] : memref<32x8xf32, #tpu.memory_space<vmem>>, vector<32x8xf32>
    %cst_27 = arith.constant dense<0.000000e+00> : vector<2x8xf32>
    %154 = tpu.matmul %152, %153, %cst_27 {dimension_numbers = #tpu.dot_dimension_numbers<[1], [0], [0], [1], [0, 0, 1, 1], [], []>} : vector<2x32xf32>, vector<32x8xf32>, vector<2x8xf32> -> vector<2x8xf32>
    %c0_28 = arith.constant 0 : index
    %c0_29 = arith.constant 0 : index
    %155 = vector.load %arg5[%c0_28, %c0_29] : memref<1x8xf32, #tpu.memory_space<vmem>>, vector<1x8xf32>
    %156 = vector.broadcast %155 : vector<1x8xf32> to vector<2x8xf32>
    %157 = arith.addf %154, %156 : vector<2x8xf32>
    %cst_30 = arith.constant 0.000000e+00 : f32
    %158 = vector.broadcast %cst_30 : f32 to vector<2x8xf32>
    %159 = arith.cmpf ogt, %157, %158 : vector<2x8xf32>
    %cst_31 = arith.constant 0.00999999977 : f32
    %160 = vector.broadcast %cst_31 : f32 to vector<2x8xf32>
    %161 = arith.mulf %160, %157 : vector<2x8xf32>
    %162 = arith.select %159, %157, %161 : vector<2x8xi1>, vector<2x8xf32>
    %c0_32 = arith.constant 0 : index
    %c0_33 = arith.constant 0 : index
    %c0_34 = arith.constant 0 : index
    %163 = vector.load %arg6[%c0_32, %c0_33, %c0_34] : memref<1x2x8xf32, #tpu.memory_space<vmem>>, vector<1x2x8xf32>
    %164 = vector.shape_cast %163 : vector<1x2x8xf32> to vector<2x8xf32>
    %165 = vector.shape_cast %162 : vector<2x8xf32> to vector<1x2x8xf32>
    tpu.vector_store %arg6[%c0_32, %c0_33, %c0_34], %165 {strides = array<i32>} : memref<1x2x8xf32, #tpu.memory_space<vmem>>, vector<1x2x8xf32>,
    return
  }
}

</mosaic_0001>

<bundles_post_ra>
// kernel: tpu_custom_call.1
= control target key start
LH: loop header
LB: loop body
LE: loop exit
PB: predicated region body
PF: predicated region fallthrough
CT: control target
= control target key end

     0   :  { %11 = vsyncpa [#allocation3], 0  ;;  %s1644_s0 = inlined_call_operand.hbm [shape: f32[16,16], index: 0, kind: input, shape index: {}]   ;;  %s1645_s1 = inlined_call_operand.hbm [shape: f32[16,128], index: 1, kind: input, shape index: {}]   ;;  %s1646_s2 = inlined_call_operand.vmem [shape: f32[32,128], index: 2, kind: input, shape index: {}]   ;;  %s1647_s3 = inlined_call_operand.vmem [shape: f32[1,128], index: 3, kind: input, shape index: {}]   ;;  %s1648_s4 = inlined_call_operand.vmem [shape: f32[32,8], index: 4, kind: input, shape index: {}]   ;;  %s1649_s5 = inlined_call_operand.vmem [shape: f32[1,8], index: 5, kind: input, shape index: {}]   ;;  %s1650_s6 = inlined_call_operand.hbm [shape: f32[1,2,8], index: 6, kind: output, shape index: {}]  }
   0x1   :  { %12 = vsyncpa [#allocation6], 0 }
   0x2   :  { %13 = vsyncpa [#allocation4], 0  ;;  %s1414_s21 = smov [#allocation2]  }
   0x3   :  { %s19_s22 = sshll.u32 %s1414_s21, 4  ;;  %s20_s22 = int_to_ptr.vmem [resolvable:$true] %s19_s22 }
   0x4   :  { %s1356_s23 = scalar_lea.vmem %s20_s22, 256  ;;  %p1361_p1 = scmp.lt.s32.totalorder %s20_s22, %s20_s22 }
   0x5   :  { %p1357_p0 = scmp.ne.s32.totalorder %s20_s22, %s1356_s23  ;;  %p1362_p2 = scmp.lt.s32.totalorder %s1356_s23, %s1356_s23 }
   0x7   :  { %p1363_p3 = por %p1362_p2, %p1361_p1 }
   0x9   :  { %p1364_p4 = pnand %p1363_p3, %p1357_p0 }
   0xb   :  { %1367 = shalt.err (!%p1364_p4)
}
   0xc   :  { %s1415_s24 = smov 128   ;;  %s1416_s25 = smov 8  }
   0xd   :  { %25 = dma.hbm_to_vmem [thread:$0]  %s1644_s0, 256, %s20_s22, [#allocation3], %s1415_s24, %s1415_s24, %s1416_s25  }
   0xe   :  { %s1417_s28 = smov [#allocation5]  }
   0xf   :  { %s31_s29 = sshll.u32 %s1417_s28, 4  ;;  %s32_s29 = int_to_ptr.vmem [resolvable:$true] %s31_s29 }
  0x10   :  { %s1376_s30 = scalar_lea.vmem %s32_s29, 256  ;;  %p1381_p6 = scmp.lt.s32.totalorder %s32_s29, %s32_s29 }
  0x11   :  { %p1377_p5 = scmp.ne.s32.totalorder %s32_s29, %s1376_s30  ;;  %p1382_p7 = scmp.lt.s32.totalorder %s1376_s30, %s1376_s30 }
  0x13   :  { %p1383_p8 = por %p1382_p7, %p1381_p6 }
  0x15   :  { %p1384_p9 = pnand %p1383_p8, %p1377_p5 }
  0x17   :  { %1387 = shalt.err (!%p1384_p9)
}
  0x18   :  { %37 = dma.hbm_to_vmem [thread:$0]  %s1645_s1, 256, %s32_s29, [#allocation6], %s1415_s24, %s1415_s24, %s1416_s25  }
  0x19   :  { %1408 = dma.done.wait [#allocation3], 256  }
  0x1a   :  { %1409 = vsyncadd [#allocation3], 4294967040 }
  0x1b   :  { %1410 = dma.done.wait [#allocation6], 256  }
  0x1c   :  { %1411 = vsyncadd [#allocation6], 4294967040  ;;  %v1418_v0 = vmov 0.0   ;;  %vm1419_vm0 = vmmov 0   ;;  %v59_v1 = vld [vmem:[#allocation5 + $0x8] sm:$0xff]  ;;  %v58_v3 = vld [vmem:[#allocation5] sm:$0xff] }
  0x1d   :  { %1176 = vmatprep.subr.mxu1 %v1418_v0  ;;  %1184 = vmatprep.mubr.msk.f32.mxu1 %vm1419_vm0, %v1418_v0  ;;  %v1470_v2 = vld [vmem:[%s1646_s2 + $0x18] sm:$0xff]  ;;  %v1476_v4 = vld [vmem:[%s1646_s2 + $0x10] sm:$0xff]  ;;  %v56_v5 = vld [vmem:[#allocation2] sm:$0xff]  ;;  %vm67_vm1 = vcmask 130048   ;;  %s1420_s16 = smov 64   ;;  %vm149_vm2 = vcmask 261120  }
  0x1e   :  { %1169 = vmatprep.subr.mxu0 %v59_v1  ;;  %1177 = vmatpush3.msra.mxu1 %v1470_v2  ;;  %v57_v6 = vld [vmem:[#allocation2 + $0x8] sm:$0xff]  ;;  %v1489_v8 = vld [vmem:[%s1646_s2] sm:$0xff]  ;;  %vm1082_vm4 = vcmask 58368  }
  0x1f   :  { %1170 = vmatpush3.msra.mxu0 %v59_v1  ;;  %1178 = vmatprep.subr.mxu1 %v1418_v0  ;;  %v1483_v7 = vld [vmem:[%s1646_s2 + $0x8] sm:$0xff]  ;;  %v1100_v9 = vld [vmem:[%s1647_s3] ss:$0 sm:$0xff]  ;;  %s1421_s3 = smov 32  }
  0x20   :  { %1171 = vmatprep.subr.mxu0 %v58_v3  ;;  %1179 = vmatpush3.msra.mxu1 %v1476_v4 }
  0x21   :  { %1172 = vmatpush3.msra.mxu0 %v58_v3  ;;  %1173 = vmatprep.mubr.msk.f32.mxu0 %vm67_vm1, %v56_v5 }
  0x22   :  { %1180 = vmatprep.subr.mxu1 %v1418_v0  ;;  %1174 = vmatmul.mubr.msk.f32.vlgmr.msra.gmra.mxu0 %vm67_vm1, %v57_v6 }
  0x23   :  { %1181 = vmatpush3.msra.mxu1 %v1483_v7  ;;  %1187 = vmatprep.subr.mxu0 %v1418_v0 }
  0x24   :  { %1182 = vmatprep.subr.mxu1 %v1418_v0  ;;  %1188 = vmatpush3.msra.mxu0 %v1470_v2 }
  0x25   :  { %1183 = vmatpush3.msra.mxu1 %v1489_v8  ;;  %1189 = vmatprep.subr.mxu0 %v1418_v0 }
  0x26   :  { %1185 = vmatmul.mubr.f32.vlgmr.msra.gmra.mxu1 %v1418_v0  ;;  %1190 = vmatpush3.msra.mxu0 %v1476_v4 }
  0x27   :  { %1191 = vmatprep.subr.mxu0 %v1418_v0  ;;  %1195 = vmatprep.mubr.msk.f32.mxu0 %vm1419_vm0, %v1418_v0 }
  0x28   :  { %1192 = vmatpush3.msra.mxu0 %v1483_v7  ;;  %1198 = vmatprep.subr.mxu1 %v1418_v0 }
  0x29   :  { %1193 = vmatprep.subr.mxu0 %v1418_v0  ;;  %1199 = vmatpush3.msra.mxu1 %v1470_v2 }
  0x2a   :  { %1194 = vmatpush3.msra.mxu0 %v1489_v8  ;;  %1200 = vmatprep.subr.mxu1 %v1418_v0 }
  0x2b   :  { %1201 = vmatpush3.msra.mxu1 %v1476_v4  ;;  %1206 = vmatprep.mubr.msk.f32.mxu1 %vm1419_vm0, %v1418_v0 }
  0x2c   :  { %1202 = vmatprep.subr.mxu1 %v1418_v0  ;;  %1209 = vmatprep.subr.mxu0 %v1418_v0 }
  0x2d   :  { %1203 = vmatpush3.msra.mxu1 %v1483_v7 }
  0x2e   :  { %1204 = vmatprep.subr.mxu1 %v1418_v0 }
  0x2f   :  { %1205 = vmatpush3.msra.mxu1 %v1489_v8 }
  0x30   :  { %1220 = vmatprep.subr.mxu1 %v1418_v0 }
  0xe2   :  { %v1175_v10 = vpop.f32.mrf.mxu0 }
  0xe3   :  { %v1520_v11 = vadd.f32 %v1175_v10, %v1100_v9 }
  0xe4   :  { %v140_v12 = vpop.f32.mrf.mxu0 }
  0xe5   :  { %v1522_v13 = vadd.f32 %v1100_v9, %v140_v12 }
  0xe6   :  { %v219_v14 = vpop.f32.mrf.mxu1 }
  0xe7   :  { %v223_v15 = vadd.f32 %v219_v14, %v1522_v13 }
  0xe8   :  { %v1186_v16 = vpop.f32.mrf.mxu1 }
  0xe9   :  { %1284 = vtanh.f32 %v223_v15  ;;  %v1103_v18 = vmul.f32 -1.442695, %v223_v15 }
  0xeb   :  { %1286 = vpow2.f32 %v1103_v18 }
  0xf6   :  { %v1285_v17 = vpop.eup %1284 }
  0xf7   :  { %233 = vrot.lane.b32.xlu0 %v1285_v17, %s1420_s16 }
  0xf8   :  { %v1287_v19 = vpop.eup %1286 }
  0xf9   :  { %v227_v20 = vadd.f32 1.0, %v1287_v19 }
  0xfb   :  { %1288 = vrcp.f32 %v227_v20 }
 0x108   :  { %v1289_v21 = vpop.eup %1288 }
 0x109   :  { %v231_v24 = vmul.f32 0.0, %v1289_v21 }
 0x169   :  { %v234_v22 = vpop.permute.xlu0 %233 }
 0x16a   :  { %v236_v23 = vmul.f32 %v1289_v21, %v234_v22 }
 0x16c   :  { %238 = vrot.lane.b32.xlu0 %v236_v23, %s1421_s3 }
 0x1de   :  { %v239_v25 = vpop.permute.xlu0 %238 }
 0x1df   :  { %v241_v26 = vadd.f32 %v239_v25, %v231_v24 }
 0x1e1   :  { %1290 = vtanh.f32 %v241_v26  ;;  %v335_v42 = vrot.slane %v241_v26, 6 }
 0x1ee   :  { %v1291_v27 = vpop.eup %1290 }
 0x1ef   :  { %244 = vrot.lane.b32.xlu1 %v1291_v27, %s1420_s16 }
 0x261   :  { %v245_v28 = vpop.permute.xlu1 %244 }
 0x262   :  { %v247_v29 = vmul.f32 %v1289_v21, %v245_v28 }
 0x264   :  { %249 = vrot.lane.b32.xlu1 %v247_v29, %s1421_s3 }
 0x2d6   :  { %v250_v30 = vpop.permute.xlu1 %249 }
 0x2d7   :  { %1196 = vmatmul.mubr.msk.f32.vlgmr.msra.gmra.mxu0 %vm149_vm2, %v250_v30 }
 0x2d8   :  { %1210 = vmatpush3.msra.mxu0 %v1470_v2  ;;  %1217 = vmatprep.mubr.msk.f32.mxu0 %vm1419_vm0, %v1418_v0 }
 0x2d9   :  { %1211 = vmatprep.subr.mxu0 %v1418_v0 }
 0x2da   :  { %1212 = vmatpush3.msra.mxu0 %v1476_v4 }
 0x2db   :  { %1213 = vmatprep.subr.mxu0 %v1418_v0 }
 0x2dc   :  { %1214 = vmatpush3.msra.mxu0 %v1483_v7 }
 0x2dd   :  { %1215 = vmatprep.subr.mxu0 %v1418_v0 }
 0x2de   :  { %1216 = vmatpush3.msra.mxu0 %v1489_v8 }
 0x2df   :  { %1231 = vmatprep.subr.mxu0 %v1418_v0 }
 0x397   :  { %v319_v31 = vpop.f32.mrf.mxu0 }
 0x398   :  { %v324_v32 = vrot.slane %v319_v31, 6 }
 0x399   :  { %v1197_v33 = vpop.f32.mrf.mxu0 }
 0x39a   :  { %v326_v34 = vadd.f32 %v324_v32, %v1522_v13 }
 0x39c   :  { %1292 = vtanh.f32 %v326_v34  ;;  %v1105_v36 = vmul.f32 -1.442695, %v326_v34 }
 0x39e   :  { %1294 = vpow2.f32 %v1105_v36 }
 0x3a9   :  { %v1293_v35 = vpop.eup %1292 }
 0x3aa   :  { %339 = vrot.lane.b32.xlu0 %v1293_v35, %s1420_s16 }
 0x3ab   :  { %v1295_v37 = vpop.eup %1294 }
 0x3ac   :  { %v330_v38 = vadd.f32 1.0, %v1295_v37 }
 0x3ae   :  { %1296 = vrcp.f32 %v330_v38 }
 0x3bb   :  { %v1297_v39 = vpop.eup %1296 }
 0x3bc   :  { %v337_v43 = vmul.f32 %v1297_v39, %v335_v42 }
 0x41c   :  { %v340_v40 = vpop.permute.xlu0 %339 }
 0x41d   :  { %v342_v41 = vmul.f32 %v1297_v39, %v340_v40 }
 0x41f   :  { %344 = vrot.lane.b32.xlu1 %v342_v41, %s1421_s3 }
 0x491   :  { %v345_v44 = vpop.permute.xlu1 %344 }
 0x492   :  { %v347_v45 = vadd.f32 %v345_v44, %v337_v43 }
 0x494   :  { %1298 = vtanh.f32 %v347_v45  ;;  %v442_v62 = vrot.slane %v347_v45, 6 }
 0x4a1   :  { %v1299_v46 = vpop.eup %1298 }
 0x4a2   :  { %350 = vrot.lane.b32.xlu0 %v1299_v46, %s1420_s16 }
 0x514   :  { %v351_v47 = vpop.permute.xlu0 %350 }
 0x515   :  { %v353_v48 = vmul.f32 %v1297_v39, %v351_v47 }
 0x517   :  { %v355_v49 = vrot.slane %v353_v48, 2 }
 0x519   :  { %356 = vrot.lane.b32.xlu1 %v355_v49, %s1421_s3 }
 0x58b   :  { %v357_v50 = vpop.permute.xlu1 %356 }
 0x58c   :  { %1207 = vmatmul.mubr.msk.f32.vlgmr.msra.gmra.mxu1 %vm149_vm2, %v357_v50 }
 0x58d   :  { %1221 = vmatpush3.msra.mxu1 %v1470_v2  ;;  %1228 = vmatprep.mubr.msk.f32.mxu1 %vm1419_vm0, %v1418_v0 }
 0x58e   :  { %1222 = vmatprep.subr.mxu1 %v1418_v0 }
 0x58f   :  { %1223 = vmatpush3.msra.mxu1 %v1476_v4 }
 0x590   :  { %1224 = vmatprep.subr.mxu1 %v1418_v0 }
 0x591   :  { %1225 = vmatpush3.msra.mxu1 %v1483_v7 }
 0x592   :  { %1226 = vmatprep.subr.mxu1 %v1418_v0 }
 0x593   :  { %1227 = vmatpush3.msra.mxu1 %v1489_v8 }
 0x594   :  { %1242 = vmatprep.subr.mxu1 %v1418_v0 }
 0x64c   :  { %v426_v51 = vpop.f32.mrf.mxu1 }
 0x64d   :  { %v431_v52 = vrot.slane %v426_v51, 4 }
 0x64e   :  { %v1208_v53 = vpop.f32.mrf.mxu1 }
 0x64f   :  { %v433_v54 = vadd.f32 %v431_v52, %v1522_v13 }
 0x651   :  { %1300 = vtanh.f32 %v433_v54  ;;  %v1107_v56 = vmul.f32 -1.442695, %v433_v54 }
 0x653   :  { %1302 = vpow2.f32 %v1107_v56 }
 0x65e   :  { %v1301_v55 = vpop.eup %1300 }
 0x65f   :  { %446 = vrot.lane.b32.xlu0 %v1301_v55, %s1420_s16 }
 0x660   :  { %v1303_v57 = vpop.eup %1302 }
 0x661   :  { %v437_v58 = vadd.f32 1.0, %v1303_v57 }
 0x663   :  { %1304 = vrcp.f32 %v437_v58 }
 0x670   :  { %v1305_v59 = vpop.eup %1304 }
 0x671   :  { %v444_v63 = vmul.f32 %v1305_v59, %v442_v62 }
 0x6d1   :  { %v447_v60 = vpop.permute.xlu0 %446 }
 0x6d2   :  { %v449_v61 = vmul.f32 %v1305_v59, %v447_v60 }
 0x6d4   :  { %451 = vrot.lane.b32.xlu1 %v449_v61, %s1421_s3 }
 0x746   :  { %v452_v1 = vpop.permute.xlu1 %451 }
 0x747   :  { %v454_v3 = vadd.f32 %v452_v1, %v444_v63 }
 0x749   :  { %1306 = vtanh.f32 %v454_v3  ;;  %v549_v25 = vrot.slane %v454_v3, 6 }
 0x756   :  { %v1307_v5 = vpop.eup %1306 }
 0x757   :  { %457 = vrot.lane.b32.xlu0 %v1307_v5, %s1420_s16 }
 0x7c9   :  { %v458_v6 = vpop.permute.xlu0 %457 }
 0x7ca   :  { %v460_v9 = vmul.f32 %v1305_v59, %v458_v6 }
 0x7cc   :  { %v462_v10 = vrot.slane %v460_v9, 4 }
 0x7ce   :  { %463 = vrot.lane.b32.xlu1 %v462_v10, %s1421_s3 }
 0x840   :  { %v464_v12 = vpop.permute.xlu1 %463 }
 0x841   :  { %1218 = vmatmul.mubr.msk.f32.vlgmr.msra.gmra.mxu0 %vm149_vm2, %v464_v12 }
 0x842   :  { %1232 = vmatpush3.msra.mxu0 %v1470_v2  ;;  %1239 = vmatprep.mubr.msk.f32.mxu0 %vm1419_vm0, %v1418_v0 }
 0x843   :  { %1233 = vmatprep.subr.mxu0 %v1418_v0 }
 0x844   :  { %1234 = vmatpush3.msra.mxu0 %v1476_v4 }
 0x845   :  { %1235 = vmatprep.subr.mxu0 %v1418_v0 }
 0x846   :  { %1236 = vmatpush3.msra.mxu0 %v1483_v7 }
 0x847   :  { %1237 = vmatprep.subr.mxu0 %v1418_v0 }
 0x848   :  { %1238 = vmatpush3.msra.mxu0 %v1489_v8 }
 0x849   :  { %1253 = vmatprep.subr.mxu0 %v1418_v0 }
 0x901   :  { %v533_v14 = vpop.f32.mrf.mxu0 }
 0x902   :  { %v538_v15 = vrot.slane %v533_v14, 2 }
 0x903   :  { %v1219_v16 = vpop.f32.mrf.mxu0 }
 0x904   :  { %v540_v17 = vadd.f32 %v538_v15, %v1522_v13 }
 0x906   :  { %1308 = vtanh.f32 %v540_v17  ;;  %v1109_v19 = vmul.f32 -1.442695, %v540_v17 }
 0x908   :  { %1310 = vpow2.f32 %v1109_v19 }
 0x913   :  { %v1309_v18 = vpop.eup %1308 }
 0x914   :  { %553 = vrot.lane.b32.xlu0 %v1309_v18, %s1420_s16 }
 0x915   :  { %v1311_v20 = vpop.eup %1310 }
 0x916   :  { %v544_v21 = vadd.f32 1.0, %v1311_v20 }
 0x918   :  { %1312 = vrcp.f32 %v544_v21 }
 0x925   :  { %v1313_v22 = vpop.eup %1312 }
 0x926   :  { %v551_v26 = vmul.f32 %v1313_v22, %v549_v25 }
 0x986   :  { %v554_v23 = vpop.permute.xlu0 %553 }
 0x987   :  { %v556_v24 = vmul.f32 %v1313_v22, %v554_v23 }
 0x989   :  { %558 = vrot.lane.b32.xlu1 %v556_v24, %s1421_s3 }
 0x9fb   :  { %v559_v27 = vpop.permute.xlu1 %558 }
 0x9fc   :  { %v561_v28 = vadd.f32 %v559_v27, %v551_v26 }
 0x9fe   :  { %1314 = vtanh.f32 %v561_v28  ;;  %v653_v43 = vrot.slane %v561_v28, 6 }
 0xa0b   :  { %v1315_v13 = vpop.eup %1314 }
 0xa0c   :  { %564 = vrot.lane.b32.xlu0 %v1315_v13, %s1420_s16 }
 0xa7e   :  { %v565_v29 = vpop.permute.xlu0 %564 }
 0xa7f   :  { %v567_v30 = vmul.f32 %v1313_v22, %v565_v29 }
 0xa81   :  { %v569_v31 = vrot.slane %v567_v30, 6 }
 0xa83   :  { %570 = vrot.lane.b32.xlu1 %v569_v31, %s1421_s3 }
 0xaf5   :  { %v571_v32 = vpop.permute.xlu1 %570 }
 0xaf6   :  { %1229 = vmatmul.mubr.msk.f32.vlgmr.msra.gmra.mxu1 %vm149_vm2, %v571_v32 }
 0xaf7   :  { %1243 = vmatpush3.msra.mxu1 %v1470_v2  ;;  %1250 = vmatprep.mubr.msk.f32.mxu1 %vm1419_vm0, %v1418_v0 }
 0xaf8   :  { %1244 = vmatprep.subr.mxu1 %v1418_v0 }
 0xaf9   :  { %1245 = vmatpush3.msra.mxu1 %v1476_v4 }
 0xafa   :  { %1246 = vmatprep.subr.mxu1 %v1418_v0 }
 0xafb   :  { %1247 = vmatpush3.msra.mxu1 %v1483_v7 }
 0xafc   :  { %1248 = vmatprep.subr.mxu1 %v1418_v0 }
 0xafd   :  { %1249 = vmatpush3.msra.mxu1 %v1489_v8 }
 0xafe   :  { %1264 = vmatprep.subr.mxu1 %v1418_v0 }
 0xbb6   :  { %v640_v33 = vpop.f32.mrf.mxu1 }
 0xbb7   :  { %v644_v34 = vadd.f32 %v640_v33, %v1520_v11 }
 0xbb8   :  { %v1230_v35 = vpop.f32.mrf.mxu1 }
 0xbb9   :  { %1316 = vtanh.f32 %v644_v34  ;;  %v1111_v37 = vmul.f32 -1.442695, %v644_v34 }
 0xbbb   :  { %1318 = vpow2.f32 %v1111_v37 }
 0xbc6   :  { %v1317_v36 = vpop.eup %1316 }
 0xbc7   :  { %657 = vrot.lane.b32.xlu0 %v1317_v36, %s1420_s16 }
 0xbc8   :  { %v1319_v38 = vpop.eup %1318 }
 0xbc9   :  { %v648_v39 = vadd.f32 1.0, %v1319_v38 }
 0xbcb   :  { %1320 = vrcp.f32 %v648_v39 }
 0xbd8   :  { %v1321_v40 = vpop.eup %1320 }
 0xbd9   :  { %v655_v44 = vmul.f32 %v1321_v40, %v653_v43 }
 0xc39   :  { %v658_v41 = vpop.permute.xlu0 %657 }
 0xc3a   :  { %v660_v42 = vmul.f32 %v1321_v40, %v658_v41 }
 0xc3c   :  { %662 = vrot.lane.b32.xlu1 %v660_v42, %s1421_s3 }
 0xcae   :  { %v663_v45 = vpop.permute.xlu1 %662 }
 0xcaf   :  { %v665_v46 = vadd.f32 %v663_v45, %v655_v44  ;;  %v994_v44 = vld [vmem:[%s1648_s4 + $0x10] sm:$0xff]  ;;  %v993_v45 = vld [vmem:[%s1648_s4 + $0x8] sm:$0xff] }
 0xcb1   :  { %1322 = vtanh.f32 %v665_v46 }
 0xcbe   :  { %v1323_v47 = vpop.eup %1322 }
 0xcbf   :  { %668 = vrot.lane.b32.xlu0 %v1323_v47, %s1420_s16 }
 0xd31   :  { %v669_v48 = vpop.permute.xlu0 %668 }
 0xd32   :  { %v671_v49 = vmul.f32 %v1321_v40, %v669_v48 }
 0xd34   :  { %673 = vrot.lane.b32.xlu1 %v671_v49, %s1421_s3 }
 0xda6   :  { %v674_v50 = vpop.permute.xlu1 %673 }
 0xda7   :  { %1240 = vmatmul.mubr.msk.f32.vlgmr.msra.gmra.mxu0 %vm149_vm2, %v674_v50 }
 0xda8   :  { %1254 = vmatpush3.msra.mxu0 %v1470_v2  ;;  %1261 = vmatprep.mubr.msk.f32.mxu0 %vm1419_vm0, %v1418_v0 }
 0xda9   :  { %1255 = vmatprep.subr.mxu0 %v1418_v0 }
 0xdaa   :  { %1256 = vmatpush3.msra.mxu0 %v1476_v4 }
 0xdab   :  { %1257 = vmatprep.subr.mxu0 %v1418_v0 }
 0xdac   :  { %1258 = vmatpush3.msra.mxu0 %v1483_v7 }
 0xdad   :  { %1259 = vmatprep.subr.mxu0 %v1418_v0 }
 0xdae   :  { %1260 = vmatpush3.msra.mxu0 %v1489_v8  ;;  %v759_v8 = vrot.slane %v665_v46, 6  ;;  %v992_v46 = vld [vmem:[%s1648_s4] sm:$0xff] }
 0xe67   :  { %v743_v51 = vpop.f32.mrf.mxu0 }
 0xe68   :  { %v748_v52 = vrot.slane %v743_v51, 6 }
 0xe69   :  { %v1241_v53 = vpop.f32.mrf.mxu0 }
 0xe6a   :  { %v750_v2 = vadd.f32 %v748_v52, %v1520_v11  ;;  %v1118_v52 = vld [vmem:[%s1649_s5] ss:$0 sm:$0xff] }
 0xe6c   :  { %1324 = vtanh.f32 %v750_v2  ;;  %v1113_v55 = vmul.f32 -1.442695, %v750_v2 }
 0xe6e   :  { %1326 = vpow2.f32 %v1113_v55 }
 0xe79   :  { %v1325_v54 = vpop.eup %1324 }
 0xe7a   :  { %763 = vrot.lane.b32.xlu0 %v1325_v54, %s1420_s16 }
 0xe7b   :  { %v1327_v4 = vpop.eup %1326 }
 0xe7c   :  { %v754_v56 = vadd.f32 1.0, %v1327_v4 }
 0xe7e   :  { %1328 = vrcp.f32 %v754_v56 }
 0xe8b   :  { %v1329_v57 = vpop.eup %1328 }
 0xe8c   :  { %v761_v59 = vmul.f32 %v1329_v57, %v759_v8 }
 0xeec   :  { %v764_v7 = vpop.permute.xlu0 %763 }
 0xeed   :  { %v766_v58 = vmul.f32 %v1329_v57, %v764_v7 }
 0xeef   :  { %768 = vrot.lane.b32.xlu1 %v766_v58, %s1421_s3 }
 0xf61   :  { %v769_v60 = vpop.permute.xlu1 %768 }
 0xf62   :  { %v771_v61 = vadd.f32 %v769_v60, %v761_v59 }
 0xf64   :  { %1330 = vtanh.f32 %v771_v61  ;;  %v866_v21 = vrot.slane %v771_v61, 6 }
 0xf71   :  { %v1331_v62 = vpop.eup %1330 }
 0xf72   :  { %774 = vrot.lane.b32.xlu0 %v1331_v62, %s1420_s16 }
 0xfe4   :  { %v775_v63 = vpop.permute.xlu0 %774 }
 0xfe5   :  { %v777_v1 = vmul.f32 %v1329_v57, %v775_v63 }
 0xfe7   :  { %v779_v3 = vrot.slane %v777_v1, 2 }
 0xfe9   :  { %780 = vrot.lane.b32.xlu1 %v779_v3, %s1421_s3 }
0x105b   :  { %v781_v5 = vpop.permute.xlu1 %780 }
0x105c   :  { %1251 = vmatmul.mubr.msk.f32.vlgmr.msra.gmra.mxu1 %vm149_vm2, %v781_v5 }
0x105d   :  { %1272 = vmatprep.mubr.msk.f32.mxu1 %vm1419_vm0, %v1418_v0 }
0x111c   :  { %v850_v6 = vpop.f32.mrf.mxu1 }
0x111d   :  { %v855_v9 = vrot.slane %v850_v6, 4 }
0x111e   :  { %v1252_v10 = vpop.f32.mrf.mxu1 }
0x111f   :  { %v857_v12 = vadd.f32 %v855_v9, %v1520_v11 }
0x1121   :  { %1332 = vtanh.f32 %v857_v12  ;;  %v1115_v15 = vmul.f32 -1.442695, %v857_v12 }
0x1123   :  { %1334 = vpow2.f32 %v1115_v15 }
0x112e   :  { %v1333_v14 = vpop.eup %1332 }
0x112f   :  { %870 = vrot.lane.b32.xlu0 %v1333_v14, %s1420_s16 }
0x1130   :  { %v1335_v16 = vpop.eup %1334 }
0x1131   :  { %v861_v17 = vadd.f32 1.0, %v1335_v16 }
0x1133   :  { %1336 = vrcp.f32 %v861_v17 }
0x1140   :  { %v1337_v18 = vpop.eup %1336 }
0x1141   :  { %v868_v22 = vmul.f32 %v1337_v18, %v866_v21 }
0x11a1   :  { %v871_v19 = vpop.permute.xlu0 %870 }
0x11a2   :  { %v873_v20 = vmul.f32 %v1337_v18, %v871_v19 }
0x11a4   :  { %875 = vrot.lane.b32.xlu1 %v873_v20, %s1421_s3 }
0x1216   :  { %v876_v23 = vpop.permute.xlu1 %875 }
0x1217   :  { %v878_v24 = vadd.f32 %v876_v23, %v868_v22 }
0x1219   :  { %1338 = vtanh.f32 %v878_v24  ;;  %v973_v40 = vrot.slane %v878_v24, 6 }
0x1226   :  { %v1339_v25 = vpop.eup %1338 }
0x1227   :  { %881 = vrot.lane.b32.xlu0 %v1339_v25, %s1420_s16 }
0x1299   :  { %v882_v26 = vpop.permute.xlu0 %881 }
0x129a   :  { %v884_v27 = vmul.f32 %v1337_v18, %v882_v26 }
0x129c   :  { %v886_v28 = vrot.slane %v884_v27, 4 }
0x129e   :  { %887 = vrot.lane.b32.xlu1 %v886_v28, %s1421_s3 }
0x1310   :  { %v888_v13 = vpop.permute.xlu1 %887 }
0x1311   :  { %1262 = vmatmul.mubr.msk.f32.vlgmr.msra.gmra.mxu0 %vm149_vm2, %v888_v13 }
0x13d1   :  { %v957_v29 = vpop.f32.mrf.mxu0 }
0x13d2   :  { %v962_v30 = vrot.slane %v957_v29, 2 }
0x13d3   :  { %v1263_v31 = vpop.f32.mrf.mxu0 }
0x13d4   :  { %v964_v32 = vadd.f32 %v962_v30, %v1520_v11  ;;  %v995_v11 = vld [vmem:[%s1648_s4 + $0x18] sm:$0xff]  ;;  %s1422_s4 = smov [#allocation7]  }
0x13d5   :  { %1265 = vmatpush3.msra.mxu1 %v995_v11  ;;  %s1090_s27 = sshll.u32 %s1422_s4, 4  ;;  %s1091_s27 = int_to_ptr.vmem [resolvable:$true] %s1090_s27 }
0x13d6   :  { %1340 = vtanh.f32 %v964_v32  ;;  %v1117_v34 = vmul.f32 -1.442695, %v964_v32  ;;  %1266 = vmatprep.subr.mxu1 %v1418_v0  ;;  %s1388_s28 = scalar_lea.vmem %s1091_s27, 32  ;;  %p1393_p11 = scmp.lt.s32.totalorder %s1091_s27, %s1091_s27 }
0x13d7   :  { %1267 = vmatpush3.msra.mxu1 %v994_v44  ;;  %p1389_p10 = scmp.ne.s32.totalorder %s1091_s27, %s1388_s28  ;;  %p1394_p12 = scmp.lt.s32.totalorder %s1388_s28, %s1388_s28 }
0x13d8   :  { %1342 = vpow2.f32 %v1117_v34  ;;  %1268 = vmatprep.subr.mxu1 %v1418_v0 }
0x13d9   :  { %1269 = vmatpush3.msra.mxu1 %v993_v45  ;;  %p1395_p13 = por %p1394_p12, %p1393_p11 }
0x13da   :  { %1270 = vmatprep.subr.mxu1 %v1418_v0 }
0x13db   :  { %1271 = vmatpush3.msra.mxu1 %v992_v46  ;;  %p1396_p0 = pnand %p1395_p13, %p1389_p10 }
0x13e3   :  { %v1341_v33 = vpop.eup %1340 }
0x13e4   :  { %977 = vrot.lane.b32.xlu0 %v1341_v33, %s1420_s16 }
0x13e5   :  { %v1343_v35 = vpop.eup %1342 }
0x13e6   :  { %v968_v36 = vadd.f32 1.0, %v1343_v35 }
0x13e8   :  { %1344 = vrcp.f32 %v968_v36 }
0x13f5   :  { %v1345_v37 = vpop.eup %1344 }
0x13f6   :  { %v975_v41 = vmul.f32 %v1345_v37, %v973_v40 }
0x1456   :  { %v978_v38 = vpop.permute.xlu0 %977 }
0x1457   :  { %v980_v39 = vmul.f32 %v1345_v37, %v978_v38 }
0x1459   :  { %982 = vrot.lane.b32.xlu1 %v980_v39, %s1421_s3 }
0x14cb   :  { %v983_v42 = vpop.permute.xlu1 %982 }
0x14cc   :  { %v985_v43 = vadd.f32 %v983_v42, %v975_v41 }
0x14ce   :  { %1346 = vtanh.f32 %v985_v43 }
0x14db   :  { %v1347_v47 = vpop.eup %1346 }
0x14dc   :  { %988 = vrot.lane.b32.xlu0 %v1347_v47, %s1420_s16 }
0x154e   :  { %v989_v48 = vpop.permute.xlu0 %988 }
0x154f   :  { %v991_v49 = vmul.f32 %v1345_v37, %v989_v48 }
0x1551   :  { %v1004_v50 = vrot.slane %v991_v49, 6 }
0x1553   :  { %1005 = vrot.lane.b32.xlu1 %v1004_v50, %s1421_s3 }
0x15c5   :  { %v1006_v51 = vpop.permute.xlu1 %1005 }
0x15c6   :  { %1273 = vmatmul.mubr.msk.f32.vlgmr.msra.gmra.mxu1 %vm149_vm2, %v1006_v51 }
0x1686   :  { %v1075_v53 = vpop.f32.mrf.mxu1 }
0x1687   :  { %v1076_v2 = vadd.f32 %v1118_v52, %v1075_v53 }
0x1688   :  { %v1274_v0 = vpop.f32.mrf.mxu1 }
0x1689   :  { %vm1079_vm3 = vcmp.gt.f32.partialorder %v1076_v2, 0.0  ;;  %v1080_v54 = vmul.f32 0.01, %v1076_v2 }
0x168b   :  { %v1081_v55 = vsel %vm1079_vm3, %v1076_v2, %v1080_v54 }
0x168c   :  { %1083 = vst.msk [vmem:[#allocation7] sm:$0x3] %vm1082_vm4, %v1081_v55 }
0x168d   :  { %1399 = shalt.err (!%p1396_p0)
}
0x168e   :  { %1093 = dma.vmem_to_hbm [thread:$0]  %s1091_s27, 32, %s1650_s6, [#allocation4]  }
0x168f   :  { %1412 = dma.done.wait [#allocation4], 32  }
0x1690   :  { %1413 = vsyncadd [#allocation4], 4294967264 }
0x1691   :  { %1097 = vsyncpa [#allocation3], 1 }
0x1692   :  { %1098 = vsyncpa [#allocation6], 1 }
0x1693   :  { %1099 = vsyncpa [#allocation4], 1 }

</bundles_post_ra>
